<compile_context>
chip_gen: v5e
topology: v5e:2x2
jax: 0.10.0
libtpu: 0.0.40
codegen_flags: <defaults>
</compile_context>

<pallas_src>
import functools
import math

import jax
import jax.numpy as jnp
from jax.experimental import pallas as pl
from jax.experimental.pallas import tpu as pltpu


_LANES = 128
_SUBLANES = 8


def _round_up(x, m):
    return ((x + m - 1) // m) * m


def _per_block_byte_budget():
    """Per-input-block byte budget (f32 basis).

    ~1 MiB gives near-roofline DMA streaming while leaving plenty of headroom
    for double-buffered in+out and in-kernel f32 intermediates under the
    default scoped-VMEM limits (16 MiB v5e, 32 MiB v6e/v7x).  Generation-aware
    via get_tpu_info when available (v7x only has 64 MiB physical VMEM/TC).
    """
    try:
        cap = int(pltpu.get_tpu_info().vmem_capacity_bytes)
    except Exception:
        cap = 64 << 20
    return max(256 << 10, min(1 << 20, cap // 64))


# ---------------------------------------------------------------------------
# Kernels
# ---------------------------------------------------------------------------

def _sigmoid_kernel(x_ref, o_ref):
    x = x_ref[...].astype(jnp.float32)
    o_ref[...] = jax.nn.sigmoid(x).astype(o_ref.dtype)


def _softmax_lane_kernel(x_ref, o_ref):
    # softmax over the last (lane) axis of a (tile_r, C) tile
    x = x_ref[...].astype(jnp.float32)
    m = jnp.max(x, axis=-1, keepdims=True)
    e = jnp.exp(x - m)
    s = jnp.sum(e, axis=-1, keepdims=True)
    o_ref[...] = (e / s).astype(o_ref.dtype)


def _logsoftmax_lane_kernel(x_ref, o_ref):
    x = x_ref[...].astype(jnp.float32)
    m = jnp.max(x, axis=-1, keepdims=True)
    sh = x - m
    lse = jnp.log(jnp.sum(jnp.exp(sh), axis=-1, keepdims=True))
    o_ref[...] = (sh - lse).astype(o_ref.dtype)


def _softmax_sublane_kernel(x_ref, o_ref):
    # softmax over the sublane axis of a (C, lane_tile) tile; lanes stay dense
    x = x_ref[...].astype(jnp.float32)
    m = jnp.max(x, axis=0, keepdims=True)
    e = jnp.exp(x - m)
    s = jnp.sum(e, axis=0, keepdims=True)
    o_ref[...] = (e / s).astype(o_ref.dtype)


def _logsoftmax_sublane_kernel(x_ref, o_ref):
    x = x_ref[...].astype(jnp.float32)
    m = jnp.max(x, axis=0, keepdims=True)
    sh = x - m
    lse = jnp.log(jnp.sum(jnp.exp(sh), axis=0, keepdims=True))
    o_ref[...] = (sh - lse).astype(o_ref.dtype)


# ---------------------------------------------------------------------------
# Wrappers (layout plumbing only: reshape / pad / slice)
# ---------------------------------------------------------------------------

def _elementwise_call(kernel, x):
    """Run an elementwise kernel over a padded, lane-dense 2-D view of x."""
    orig_shape = x.shape
    total = x.size
    if total == 0:
        return x

    budget = _per_block_byte_budget()
    # Byte-budgeted row tile (f32 compute basis), multiple of 8 sublanes.
    max_rows = max(_SUBLANES,
                   (budget // (_LANES * 4)) // _SUBLANES * _SUBLANES)

    rows = pl.cdiv(total, _LANES)
    tile_r = min(max_rows, _round_up(rows, _SUBLANES))
    rows_p = _round_up(rows, tile_r)
    padded_total = rows_p * _LANES

    xf = x.reshape(-1)
    if padded_total != total:
        xf = jnp.pad(xf, (0, padded_total - total))
    x2 = xf.reshape(rows_p, _LANES)

    out2 = pl.pallas_call(
        kernel,
        out_shape=jax.ShapeDtypeStruct((rows_p, _LANES), x.dtype),
        grid=(rows_p // tile_r,),
        in_specs=[pl.BlockSpec((tile_r, _LANES), lambda i: (i, 0))],
        out_specs=pl.BlockSpec((tile_r, _LANES), lambda i: (i, 0)),
        compiler_params=pltpu.CompilerParams(
            dimension_semantics=("parallel",)),
    )(x2)

    out = out2.reshape(-1)
    if padded_total != total:
        out = out[:total]
    return out.reshape(orig_shape)


def _axis_reduce_call(lane_kernel, sublane_kernel, x, dim):
    """softmax-style reduction over axis `dim` of x, without any transpose."""
    ndim = x.ndim
    dim = dim % ndim
    shape = x.shape
    c = shape[dim]
    if x.size == 0:
        return x
    budget = _per_block_byte_budget()

    if dim == ndim - 1:
        # Reduction axis already maps to lanes: [rows, C], reduce axis=-1.
        rows = x.size // c
        x2 = x.reshape(rows, c)
        bytes_per_row = max(1, c * 4)
        max_rows = max(_SUBLANES,
                       (budget // bytes_per_row) // _SUBLANES * _SUBLANES)
        tile_r = min(max_rows, _round_up(rows, _SUBLANES))
        rows_p = _round_up(rows, tile_r)
        if rows_p != rows:
            # padded rows are zeros -> harmless, sliced off afterwards
            x2 = jnp.pad(x2, ((0, rows_p - rows), (0, 0)))
        out2 = pl.pallas_call(
            lane_kernel,
            out_shape=jax.ShapeDtypeStruct((rows_p, c), x.dtype),
            grid=(rows_p // tile_r,),
            in_specs=[pl.BlockSpec((tile_r, c), lambda i: (i, 0))],
            out_specs=pl.BlockSpec((tile_r, c), lambda i: (i, 0)),
            compiler_params=pltpu.CompilerParams(
                dimension_semantics=("parallel",)),
        )(x2)
        if rows_p != rows:
            out2 = out2[:rows]
        return out2.reshape(shape)

    # Non-last reduction axis (softmax2d channel axis of NCHW, etc.):
    # reshape to [outer, C, inner]  (free for contiguous arrays — no
    # moveaxis / HBM transpose), reduce over the SUBLANE axis and keep
    # `inner` (e.g. H*W) lane-dense so stores are unmasked 128-lane vst.
    # TODO(synk): an extremely large reduction dim C would need a multi-pass
    # streaming kernel; typical segmentation channel counts fit one block.
    outer = math.prod(shape[:dim])
    inner = math.prod(shape[dim + 1:])
    x3 = x.reshape(outer, c, inner)

    bytes_per_lane = max(1, c * 4)
    max_lanes = max(_LANES, (budget // bytes_per_lane) // _LANES * _LANES)
    lane_tile = min(max_lanes, _round_up(inner, _LANES))
    inner_p = _round_up(inner, lane_tile)
    if inner_p != inner:
        x3 = jnp.pad(x3, ((0, 0), (0, 0), (0, inner_p - inner)))

    out3 = pl.pallas_call(
        sublane_kernel,
        out_shape=jax.ShapeDtypeStruct((outer, c, inner_p), x.dtype),
        grid=(outer, inner_p // lane_tile),
        # leading dim squeezed away -> kernel sees a clean (C, lane_tile) tile
        in_specs=[pl.BlockSpec((None, c, lane_tile), lambda b, j: (b, 0, j))],
        out_specs=pl.BlockSpec((None, c, lane_tile), lambda b, j: (b, 0, j)),
        compiler_params=pltpu.CompilerParams(
            dimension_semantics=("parallel", "parallel")),
    )(x3)
    if inner_p != inner:
        out3 = out3[:, :, :inner]
    return out3.reshape(shape)


def _softmax_default_dim(ndim):
    """PyTorch legacy nn.Softmax/LogSoftmax dim selection when dim is omitted."""
    return 0 if ndim in (0, 1, 3) else 1


# ---------------------------------------------------------------------------
# Module
# ---------------------------------------------------------------------------

class Activation:
    """JAX/Pallas equivalent of the PyTorch Activation dispatch module."""

    def __init__(self, name, **params):
        if name is None or name == "identity":
            # No-op: a copy kernel would burn a full HBM round trip for zero work.
            self._fn = lambda x: x
        elif name == "sigmoid":
            self._fn = functools.partial(_elementwise_call, _sigmoid_kernel)
        elif name == "softmax2d":
            self._fn = lambda x: _axis_reduce_call(
                _softmax_lane_kernel, _softmax_sublane_kernel, x, 1)
        elif name == "softmax":
            dim = params.get("dim", None)
            self._fn = lambda x: _axis_reduce_call(
                _softmax_lane_kernel, _softmax_sublane_kernel, x,
                dim if dim is not None else _softmax_default_dim(x.ndim))
        elif name == "logsoftmax":
            dim = params.get("dim", None)
            self._fn = lambda x: _axis_reduce_call(
                _logsoftmax_lane_kernel, _logsoftmax_sublane_kernel, x,
                dim if dim is not None else _softmax_default_dim(x.ndim))
        elif callable(name):
            # TODO(synk): arbitrary callable activations cannot be translated
            # generically into a Pallas kernel; call the object as-is.
            self._fn = name(**params)
        else:
            raise ValueError(
                "Activation should be callable/sigmoid/softmax/logsoftmax/None;"
                " got {}".format(name))

    def __call__(self, x):
        return self._fn(x)


# ---------------------------------------------------------------------------
# Demo / self-test
# ---------------------------------------------------------------------------

if __name__ == "__main__":
    key = jax.random.PRNGKey(0)
    # NCHW input, as in PyTorch segmentation heads
    x = jax.random.normal(key, (2, 4, 16, 16), dtype=jnp.float32)

    # identity -> pure pass-through
    y_id = jax.block_until_ready(Activation("identity")(x))
    assert jnp.array_equal(y_id, x)

    # sigmoid (elementwise, lane-dense padded slab)
    y_sig = jax.block_until_ready(Activation("sigmoid")(x))
    assert jnp.allclose(y_sig, jax.nn.sigmoid(x), atol=1e-5)

    # sigmoid on a shape whose element count is NOT a multiple of 128 (padding path)
    x_odd = jax.random.normal(jax.random.PRNGKey(1), (3, 5, 7), dtype=jnp.float32)
    y_odd = jax.block_until_ready(Activation("sigmoid")(x_odd))
    assert jnp.allclose(y_odd, jax.nn.sigmoid(x_odd), atol=1e-5)

    # softmax2d -> softmax over channel dim (sublane-reduce path, no transpose)
    y_sm2d = jax.block_until_ready(Activation("softmax2d")(x))
    assert jnp.allclose(y_sm2d, jax.nn.softmax(x, axis=1), atol=1e-5)

    # softmax over explicit dims: channel (sublane path) and last (lane path)
    y_sm1 = jax.block_until_ready(Activation("softmax", dim=1)(x))
    assert jnp.allclose(y_sm1, jax.nn.softmax(x, axis=1), atol=1e-5)
    y_sml = jax.block_until_ready(Activation("softmax", dim=-1)(x))
    assert jnp.allclose(y_sml, jax.nn.softmax(x, axis=-1), atol=1e-5)

    # logsoftmax over channel and last dims
    y_lsm1 = jax.block_until_ready(Activation("logsoftmax", dim=1)(x))
    assert jnp.allclose(y_lsm1, jax.nn.log_softmax(x, axis=1), atol=1e-5)
    y_lsml = jax.block_until_ready(Activation("logsoftmax", dim=-1)(x))
    assert jnp.allclose(y_lsml, jax.nn.log_softmax(x, axis=-1), atol=1e-5)

    print("KERNEL_OK")
</pallas_src>

<mosaic_0001>
module attributes {stable_mosaic.version = 11 : i64} {
  func.func @_sigmoid_kernel(%arg0: i32, %arg1: memref<16x128xf32, #tpu.memory_space<vmem>>, %arg2: memref<16x128xf32, #tpu.memory_space<vmem>>) attributes {dimension_semantics = [#tpu.dimension_semantics<parallel>], iteration_bounds = array<i64: 1>, scalar_prefetch = 0 : i64, scratch_operands = 0 : i64, tpu.core_type = #tpu.core_type<tc>, window_params = [{transform_indices = @transform_0, window_bounds = array<i64: 16, 128>}, {transform_indices = @transform_1, window_bounds = array<i64: 16, 128>}]} {
    %c0 = arith.constant 0 : index
    %c0_0 = arith.constant 0 : index
    %0 = vector.load %arg1[%c0, %c0_0] : memref<16x128xf32, #tpu.memory_space<vmem>>, vector<16x128xf32>
    %1 = arith.negf %0 : vector<16x128xf32>
    %2 = math.exp %1 : vector<16x128xf32>
    %cst = arith.constant 1.000000e+00 : f32
    %3 = vector.broadcast %cst : f32 to vector<16x128xf32>
    %4 = arith.addf %3, %2 : vector<16x128xf32>
    %5 = arith.divf %3, %4 : vector<16x128xf32>
    %c0_1 = arith.constant 0 : index
    %c0_2 = arith.constant 0 : index
    %6 = vector.load %arg2[%c0_1, %c0_2] : memref<16x128xf32, #tpu.memory_space<vmem>>, vector<16x128xf32>
    tpu.vector_store %arg2[%c0_1, %c0_2], %5 {strides = array<i32>} : memref<16x128xf32, #tpu.memory_space<vmem>>, vector<16x128xf32>,
    return
  }
  func.func @transform_0(%arg0: i32) -> (i32, i32) {
    %c0_i32 = arith.constant 0 : i32
    %c0_i32_0 = arith.constant 0 : i32
    return %arg0, %c0_i32 : i32, i32
  }
  func.func @transform_1(%arg0: i32) -> (i32, i32) {
    %c0_i32 = arith.constant 0 : i32
    %c0_i32_0 = arith.constant 0 : i32
    return %arg0, %c0_i32 : i32, i32
  }
}

</mosaic_0001>

<bundles_post_ra>
// kernel: tpu_custom_call.1
= control target key start
LH: loop header
LB: loop body
LE: loop exit
PB: predicated region body
PF: predicated region fallthrough
CT: control target
= control target key end

     0   :  { %6 = vsyncpa [#allocation3], 0  ;;  %s178_s0 = inlined_call_operand.hbm [shape: f32[16,128], index: 0, kind: input, shape index: {}]   ;;  %s179_s1 = inlined_call_operand.hbm [shape: f32[16,128], index: 1, kind: output, shape index: {}]  }
   0x1   :  { %7 = vsyncpa [#allocation4], 0  ;;  %s12_s8 = sshll.u32 %s178_s0, 4  ;;  %s152_s9 = smov [#allocation2]   ;;  %s13_s8 = int_to_ptr.hbm [resolvable:$true] %s12_s8 }
   0x2   :  { %s14_s10 = sshll.u32 %s152_s9, 4  ;;  %s153_s11 = smov 128   ;;  %s15_s10 = int_to_ptr.vmem [resolvable:$true] %s14_s10 }
   0x3   :  { %s154_s12 = smov 8  }
   0x4   :  { %20 = dma.hbm_to_vmem [thread:$0]  %s13_s8, 256, %s15_s10, [#allocation3], %s153_s11, %s153_s11, %s154_s12  }
   0x5   :  { %148 = dma.done.wait [#allocation3], 256  }
   0x6   :  { %149 = vsyncadd [#allocation3], 4294967040  ;;  %v25_v0 = vld [vmem:[#allocation2] sm:$0xff]  ;;  %v26_v1 = vld [vmem:[#allocation2 + $0x8] sm:$0xff]  ;;  %s155_s0 = smov [#allocation5]   ;;  %s73_s16 = sshll.u32 %s179_s1, 4  ;;  %s74_s16 = int_to_ptr.hbm [resolvable:$true] %s73_s16 }
   0x7   :  { %v86_v2 = vmul.f32 -1.442695, %v25_v0  ;;  %v87_v3 = vmul.f32 -1.442695, %v26_v1  ;;  %s71_s13 = sshll.u32 %s155_s0, 4  ;;  %s72_s13 = int_to_ptr.vmem [resolvable:$true] %s71_s13 }
   0x9   :  { %92 = vpow2.f32 %v86_v2 }
   0xa   :  { %94 = vpow2.f32 %v87_v3 }
   0xf   :  { %v93_v4 = vpop.eup %92 }
  0x10   :  { %v95_v5 = vpop.eup %94  ;;  %v33_v6 = vadd.f32 1.0, %v93_v4 }
  0x11   :  { %v34_v7 = vadd.f32 1.0, %v95_v5 }
  0x12   :  { %96 = vrcp.f32 %v33_v6  ;;  %vm40_vm0 = vweird.f32 %v33_v6  ;;  %v46_v11 = vand.u32 2147483648, %v33_v6  ;;  %v44_v14 = vand.u32 2147483647, %v33_v6 }
  0x13   :  { %98 = vrcp.f32 %v34_v7  ;;  %v61_v15 = vand.u32 2147483648, %v34_v7  ;;  %vm55_vm2 = vweird.f32 %v34_v7  ;;  %v59_v17 = vand.u32 2147483647, %v34_v7 }
  0x14   :  { %v47_v19 = vor.u32 1.1754944e-38, %v46_v11  ;;  %vm45_vm5 = vcmp.eq.f32.partialorder %v44_v14, 8.507059e+37 }
  0x15   :  { %v62_v22 = vor.u32 1.1754944e-38, %v61_v15  ;;  %vm60_vm7 = vcmp.eq.f32.partialorder %v59_v17, 8.507059e+37 }
  0x18   :  { %v97_v8 = vpop.eup %96 }
  0x19   :  { %v99_v9 = vpop.eup %98  ;;  %v36_v10 = vmul.f32 %v97_v8, %v33_v6  ;;  %vm41_vm1 = vweird.f32 %v97_v8 }
  0x1a   :  { %v51_v12 = vmul.f32 %v99_v9, %v34_v7  ;;  %vm56_vm3 = vweird.f32 %v99_v9  ;;  %vm42_vm4 = vmor %vm40_vm0, %vm41_vm1 }
  0x1b   :  { %v37_v13 = vsub.f32 1.0, %v36_v10  ;;  %vm57_vm6 = vmor %vm55_vm2, %vm56_vm3 }
  0x1c   :  { %v52_v16 = vsub.f32 1.0, %v51_v12 }
  0x1d   :  { %v38_v18 = vmul.f32 %v97_v8, %v37_v13 }
  0x1e   :  { %v53_v20 = vmul.f32 %v99_v9, %v52_v16 }
  0x1f   :  { %v39_v21 = vadd.f32 %v97_v8, %v38_v18 }
  0x20   :  { %v54_v23 = vadd.f32 %v99_v9, %v53_v20 }
  0x21   :  { %v43_v24 = vsel %vm42_vm4, %v97_v8, %v39_v21 }
  0x22   :  { %v48_v25 = vsel %vm45_vm5, %v47_v19, %v43_v24  ;;  %v58_v26 = vsel %vm57_vm6, %v99_v9, %v54_v23 }
  0x23   :  { %65 = vst [vmem:[#allocation5] sm:$0xff] %v48_v25  ;;  %v63_v27 = vsel %vm60_vm7, %v62_v22, %v58_v26 }
  0x24   :  { %66 = vst [vmem:[#allocation5 + $0x8] sm:$0xff] %v63_v27 }
  0x25   :  { %79 = dma.vmem_to_hbm [thread:$0]  %s72_s13, 256, %s74_s16, [#allocation4], %s153_s11, %s153_s11, %s154_s12  }
  0x26   :  { %150 = dma.done.wait [#allocation4], 256  }
  0x27   :  { %151 = vsyncadd [#allocation4], 4294967040 }
  0x28   :  { %84 = vsyncpa [#allocation3], 1 }
  0x29   :  { %85 = vsyncpa [#allocation4], 1 }

</bundles_post_ra>
